<compile_context>
chip_gen: v7x
topology: tpu7x:2x2x1
jax: 0.10.0
libtpu: 0.0.40
codegen_flags: <defaults>
</compile_context>

<pallas_src>
from functools import partial

import numpy as np
import jax
import jax.numpy as jnp
from jax.experimental import pallas as pl
from jax.experimental.pallas import tpu as pltpu

MAX_CLASSES = 8            # classes padded to 8 (sublane-friendly)
HEAD_CLASSES = (2, 3, 8)   # decision 0: rotate?/not, 1: rotation axis, 2: operation
LANES = 128
NEG_BIG = np.float32(-1e30)


# ----------------------------- kernel -------------------------------------- #

def _sample_kernel(logp_ref, u_ref, act_ref, lp_ref):
    """Per-batch-row Gumbel-max sampling over all heads at once.

    logp_ref: (8, Hp)      masked log-softmax table (classes on sublanes,
                           heads on lanes; -1e30 on invalid classes,
                           pad head columns are [0, -1e30, ...]).
    u_ref:    (1, 8, Hp)   uniforms in (0, 1) for this batch row.
    act_ref:  (1, 1, Hp)   int32 sampled class per head (lane-dense row).
    lp_ref:   (1, 1, Hp)   f32 log-prob of the sampled class per head.
    """
    logp = logp_ref[...]                                   # (8, Hp)
    u = u_ref[0]                                           # (8, Hp)

    g = -jnp.log(-jnp.log(u))                              # Gumbel(0, 1)
    score = logp + g                                       # invalid rows stay ~-1e30
    best = jnp.max(score, axis=0, keepdims=True)           # (1, Hp)

    C, Hp = logp.shape
    cls = jax.lax.broadcasted_iota(jnp.int32, (C, Hp), 0)  # class index per row
    clsf = cls.astype(jnp.float32)
    action_f = jnp.min(jnp.where(score >= best, clsf, jnp.float32(C)),
                       axis=0, keepdims=True)              # first argmax row
    action = action_f.astype(jnp.int32)                    # (1, Hp)

    sel = (cls == action).astype(jnp.float32)
    lp = jnp.sum(sel * logp, axis=0, keepdims=True)        # (1, Hp)

    act_ref[...] = action[None]                            # (1, 1, Hp)
    lp_ref[...] = lp[None]                                 # (1, 1, Hp)


# ----------------------------- wrapper -------------------------------------- #

@partial(jax.jit, static_argnums=(2,))
def sample_heads(key, logp_pad, batch):
    """Draw `batch` independent designs in ONE pallas_call.

    Returns (actions (batch, Hp) int32, log_prob (batch,) f32, new_key).
    """
    C, Hp = logp_pad.shape
    key, sub = jax.random.split(key)
    # uniforms strictly inside (0, 1) so -log(-log(u)) is finite
    u = jax.random.uniform(sub, (batch, C, Hp), jnp.float32,
                           minval=1e-12, maxval=1.0)

    actions, lp_heads = pl.pallas_call(
        _sample_kernel,
        out_shape=(jax.ShapeDtypeStruct((batch, 1, Hp), jnp.int32),
                   jax.ShapeDtypeStruct((batch, 1, Hp), jnp.float32)),
        grid=(batch,),
        in_specs=[pl.BlockSpec((C, Hp), lambda b: (0, 0)),        # constant table
                  pl.BlockSpec((1, C, Hp), lambda b: (b, 0, 0))], # per-row uniforms
        out_specs=(pl.BlockSpec((1, 1, Hp), lambda b: (b, 0, 0)),
                   pl.BlockSpec((1, 1, Hp), lambda b: (b, 0, 0))),
        compiler_params=pltpu.CompilerParams(
            dimension_semantics=("parallel",)),                   # v7x: 2 TCs
    )(logp_pad, u)

    actions = actions.reshape(batch, Hp)
    # padded head columns contribute exactly 0.0, so summing the full row is safe
    log_prob = jnp.sum(lp_heads.reshape(batch, Hp), axis=-1)
    return actions, log_prob, key


# ----------------------------- host-side init ------------------------------- #

def _fold_bn(num_features, eps=1e-5, gamma=None, beta=None, mean=None, var=None):
    """Eval-mode BatchNorm1d folded to (scale, shift). Defaults = fresh stats."""
    gamma = np.ones(num_features, np.float64) if gamma is None else np.asarray(gamma, np.float64)
    beta = np.zeros(num_features, np.float64) if beta is None else np.asarray(beta, np.float64)
    mean = np.zeros(num_features, np.float64) if mean is None else np.asarray(mean, np.float64)
    var = np.ones(num_features, np.float64) if var is None else np.asarray(var, np.float64)
    scale = gamma / np.sqrt(var + eps)
    shift = beta - mean * scale
    return scale, shift


def _leaky(x):
    return np.where(x > 0, x, 0.01 * x)


def _linear_init(k, fan_in, fan_out):
    """torch nn.Linear default init: U(-1/sqrt(fan_in), 1/sqrt(fan_in))."""
    kw, kb = jax.random.split(k)
    bound = 1.0 / np.sqrt(fan_in)
    W = jax.random.uniform(kw, (fan_in, fan_out), jnp.float32, -bound, bound)
    b = jax.random.uniform(kb, (fan_out,), jnp.float32, -bound, bound)
    return np.asarray(W, np.float64), np.asarray(b, np.float64)


class ControllerPallas:
    ROTATIONS = ['x', 'y', 'z']
    OPERATIONS = ['H', 'Px', 'Py', 'Pz', 'CNot', 'CSwap', 'Tof', 'CZ']

    def __init__(self, q_depth, n_qubits, key):
        self.q_depth = q_depth
        self.n_qubits = n_qubits
        self.H = q_depth * n_qubits * 3
        self.Hp = ((self.H + LANES - 1) // LANES) * LANES

        keys = jax.random.split(key, 4)
        w1, b1 = _linear_init(keys[0], 1, 48)   # shared_fc1, stored (in, out)
        w2, b2 = _linear_init(keys[1], 48, 12)  # shared_fc2

        # ---- shared trunk, fully constant-folded on host --------------------
        s1, t1 = _fold_bn(48)
        s2, t2 = _fold_bn(12)
        x = _leaky((w1.reshape(48) + b1) * s1 + t1)        # fc1(1.0) -> BN1 -> leaky
        # dropout1: eval -> identity
        x = _leaky((x @ w2 + b2) * s2 + t2)                # fc2 -> BN2 -> leaky
        # dropout2: eval -> identity                       # x: (12,)

        # ---- unique action heads keyed by (layer % 6, node % 4, decision) ---
        heads = {}
        hkey = keys[2]
        logits = np.zeros((self.H, MAX_CLASSES), np.float64)
        i = 0
        for l in range(q_depth):
            for n in range(n_qubits):
                for d in range(3):
                    kk = (l % 6, n % 4, d)
                    if kk not in heads:
                        hkey, sub = jax.random.split(hkey)
                        heads[kk] = _linear_init(sub, 12, HEAD_CLASSES[d])
                    W, b = heads[kk]
                    C = HEAD_CLASSES[d]
                    logits[i, :C] = x @ W + b
                    i += 1

        # ---- masked log-softmax table + constant entropy (hoisted out of the
        #      hot kernel entirely) -------------------------------------------
        logp_T = np.full((MAX_CLASSES, self.Hp), NEG_BIG, np.float32)
        total_entropy = 0.0
        i = 0
        for l in range(q_depth):
            for n in range(n_qubits):
                for d in range(3):
                    C = HEAD_CLASSES[d]
                    z = logits[i, :C]
                    m = z.max()
                    e = np.exp(z - m)
                    denom = e.sum()
                    logp = (z - m) - np.log(denom)
                    p = e / denom
                    total_entropy += float(-(p * logp).sum())
                    logp_T[:C, i] = logp.astype(np.float32)
                    i += 1
        # padded head columns: always sample class 0 with log-prob exactly 0
        if self.Hp > self.H:
            logp_T[0, self.H:] = 0.0

        self.logp_pad = jnp.asarray(logp_T)                 # (8, Hp) f32, device-resident
        self.entropy = jnp.float32(total_entropy)           # constant (eval mode)
        self._key = keys[3]                                  # RNG state stays on device

    # ---- one sample per call (matches the torch module's forward) ------------
    def forward(self):
        actions, log_prob, self._key = sample_heads(self._key, self.logp_pad, 1)
        acts = np.asarray(actions)[0, :self.H].reshape(self.q_depth, self.n_qubits, 3)
        return self.post_process(acts), self.entropy, log_prob[0]

    # ---- batched sampling for RL loops (one pallas_call for B designs) -------
    def sample_designs(self, batch):
        actions, log_prob, self._key = sample_heads(self._key, self.logp_pad, batch)
        acts = np.asarray(actions)[:, :self.H].reshape(batch, self.q_depth,
                                                       self.n_qubits, 3)
        designs = [self.post_process(acts[b]) for b in range(batch)]
        return designs, self.entropy, log_prob

    def post_process(self, design):
        # pure Python glue, identical mapping to the torch module
        updated = {}
        for l in range(self.q_depth):
            for n in range(self.n_qubits):
                key = str(l) + str(n)
                updated[key + '0'] = bool(design[l, n, 0] != 0)
                updated[key + '1'] = self.ROTATIONS[int(design[l, n, 1])]
                updated[key + '2'] = self.OPERATIONS[int(design[l, n, 2])]
        return updated


if __name__ == "__main__":
    # small config: args.q_depth=2, args.n_qubits=3  ->  H = 18 heads
    ctrl = ControllerPallas(q_depth=2, n_qubits=3, key=jax.random.PRNGKey(0))

    design, entropy, log_prob = ctrl.forward()
    jax.block_until_ready(log_prob)
    assert len(design) == 2 * 3 * 3
    assert np.isfinite(float(entropy)) and np.isfinite(float(log_prob))
    assert float(log_prob) <= 0.0

    # second forward: only the sampling kernel runs (cached jit, fresh key)
    design2, entropy2, log_prob2 = ctrl.forward()
    jax.block_until_ready(log_prob2)
    assert len(design2) == 2 * 3 * 3

    # batched sampling: 4 designs from a single pallas_call
    designs, ent_b, lps = ctrl.sample_designs(4)
    jax.block_until_ready(lps)
    assert len(designs) == 4
    assert np.all(np.isfinite(np.asarray(lps))) and np.all(np.asarray(lps) <= 0.0)

    print("KERNEL_OK")
</pallas_src>

<mosaic_0001>
module attributes {stable_mosaic.version = 11 : i64} {
  func.func @_sample_kernel(%arg0: i32, %arg1: memref<8x128xf32, #tpu.memory_space<vmem>>, %arg2: memref<1x8x128xf32, #tpu.memory_space<vmem>>, %arg3: memref<1x1x128xi32, #tpu.memory_space<vmem>>, %arg4: memref<1x1x128xf32, #tpu.memory_space<vmem>>) attributes {dimension_semantics = [#tpu.dimension_semantics<parallel>], iteration_bounds = array<i64: 1>, scalar_prefetch = 0 : i64, scratch_operands = 0 : i64, tpu.core_type = #tpu.core_type<tc>, window_params = [{pipeline_mode = #tpu.pipeline_mode<synchronous>, transform_indices = @transform_0, window_bounds = array<i64: 8, 128>}, {transform_indices = @transform_1, window_bounds = array<i64: 1, 8, 128>}, {transform_indices = @transform_2, window_bounds = array<i64: 1, 1, 128>}, {transform_indices = @transform_3, window_bounds = array<i64: 1, 1, 128>}]} {
    %c0 = arith.constant 0 : index
    %c0_0 = arith.constant 0 : index
    %0 = vector.load %arg1[%c0, %c0_0] : memref<8x128xf32, #tpu.memory_space<vmem>>, vector<8x128xf32>
    %c0_1 = arith.constant 0 : index
    %c0_2 = arith.constant 0 : index
    %c0_3 = arith.constant 0 : index
    %1 = vector.load %arg2[%c0_1, %c0_2, %c0_3] : memref<1x8x128xf32, #tpu.memory_space<vmem>>, vector<1x8x128xf32>
    %2 = vector.shape_cast %1 : vector<1x8x128xf32> to vector<8x128xf32>
    %3 = math.log %2 : vector<8x128xf32>
    %cst = arith.constant 0.000000e+00 : f32
    %4 = vector.broadcast %cst : f32 to vector<8x128xf32>
    %5 = arith.subf %4, %3 : vector<8x128xf32>
    %6 = math.log %5 : vector<8x128xf32>
    %cst_4 = arith.constant 0.000000e+00 : f32
    %7 = vector.broadcast %cst_4 : f32 to vector<8x128xf32>
    %8 = arith.subf %7, %6 : vector<8x128xf32>
    %9 = arith.addf %0, %8 : vector<8x128xf32>
    %cst_5 = arith.constant dense<0xFF800000> : vector<128xf32>
    %10 = vector.multi_reduction <maximumf>, %9, %cst_5 [0] : vector<8x128xf32> to vector<128xf32>
    %11 = vector.shape_cast %10 : vector<128xf32> to vector<1x128xf32>
    %12 = tpu.iota {dimensions = array<i32: 0>} : vector<8x128xi32>
    %13 = arith.sitofp %12 : vector<8x128xi32> to vector<8x128xf32>
    %14 = vector.broadcast %11 : vector<1x128xf32> to vector<8x128xf32>
    %15 = arith.cmpf oge, %9, %14 : vector<8x128xf32>
    %cst_6 = arith.constant 8.000000e+00 : f32
    %16 = vector.broadcast %cst_6 : f32 to vector<8x128xf32>
    %17 = arith.select %15, %13, %16 : vector<8x128xi1>, vector<8x128xf32>
    %cst_7 = arith.constant dense<0x7F800000> : vector<128xf32>
    %18 = vector.multi_reduction <minimumf>, %17, %cst_7 [0] : vector<8x128xf32> to vector<128xf32>
    %19 = vector.shape_cast %18 : vector<128xf32> to vector<1x128xf32>
    %20 = arith.fptosi %19 : vector<1x128xf32> to vector<1x128xi32>
    %21 = vector.broadcast %20 : vector<1x128xi32> to vector<8x128xi32>
    %22 = arith.cmpi eq, %12, %21 : vector<8x128xi32>
    %23 = arith.extui %22 : vector<8x128xi1> to vector<8x128xi32>
    %24 = arith.sitofp %23 : vector<8x128xi32> to vector<8x128xf32>
    %25 = arith.mulf %24, %0 : vector<8x128xf32>
    %cst_8 = arith.constant dense<0.000000e+00> : vector<128xf32>
    %26 = vector.multi_reduction <add>, %25, %cst_8 [0] : vector<8x128xf32> to vector<128xf32>
    %27 = vector.shape_cast %26 : vector<128xf32> to vector<1x128xf32>
    %28 = vector.shape_cast %20 : vector<1x128xi32> to vector<1x1x128xi32>
    %c0_9 = arith.constant 0 : index
    %c0_10 = arith.constant 0 : index
    %c0_11 = arith.constant 0 : index
    %29 = vector.load %arg3[%c0_9, %c0_10, %c0_11] : memref<1x1x128xi32, #tpu.memory_space<vmem>>, vector<1x1x128xi32>
    tpu.vector_store %arg3[%c0_9, %c0_10, %c0_11], %28 {strides = array<i32>} : memref<1x1x128xi32, #tpu.memory_space<vmem>>, vector<1x1x128xi32>,
    %30 = vector.shape_cast %27 : vector<1x128xf32> to vector<1x1x128xf32>
    %c0_12 = arith.constant 0 : index
    %c0_13 = arith.constant 0 : index
    %c0_14 = arith.constant 0 : index
    %31 = vector.load %arg4[%c0_12, %c0_13, %c0_14] : memref<1x1x128xf32, #tpu.memory_space<vmem>>, vector<1x1x128xf32>
    tpu.vector_store %arg4[%c0_12, %c0_13, %c0_14], %30 {strides = array<i32>} : memref<1x1x128xf32, #tpu.memory_space<vmem>>, vector<1x1x128xf32>,
    return
  }
  func.func @transform_0(%arg0: i32) -> (i32, i32) {
    %c0_i32 = arith.constant 0 : i32
    %c0_i32_0 = arith.constant 0 : i32
    %c0_i32_1 = arith.constant 0 : i32
    return %c0_i32, %c0_i32_0 : i32, i32
  }
  func.func @transform_1(%arg0: i32) -> (i32, i32, i32) {
    %c0_i32 = arith.constant 0 : i32
    %c0_i32_0 = arith.constant 0 : i32
    %c0_i32_1 = arith.constant 0 : i32
    return %arg0, %c0_i32, %c0_i32_0 : i32, i32, i32
  }
  func.func @transform_2(%arg0: i32) -> (i32, i32, i32) {
    %c0_i32 = arith.constant 0 : i32
    %c0_i32_0 = arith.constant 0 : i32
    %c0_i32_1 = arith.constant 0 : i32
    return %arg0, %c0_i32, %c0_i32_0 : i32, i32, i32
  }
  func.func @transform_3(%arg0: i32) -> (i32, i32, i32) {
    %c0_i32 = arith.constant 0 : i32
    %c0_i32_0 = arith.constant 0 : i32
    %c0_i32_1 = arith.constant 0 : i32
    return %arg0, %c0_i32, %c0_i32_0 : i32, i32, i32
  }
}

</mosaic_0001>

<bundles_post_ra>
// kernel: sample_heads.3
= control target key start
LH: loop header
LB: loop body
LE: loop exit
PB: predicated region body
PF: predicated region fallthrough
CT: control target
= control target key end

     0   :  { %s147_s0 = inlined_call_operand.vmem [shape: f32[8,128], index: 0, kind: input, shape index: {}]   ;;  %s148_s1 = inlined_call_operand.vmem [shape: f32[1,8,128], index: 1, kind: input, shape index: {}]   ;;  %s149_s2 = inlined_call_operand.hbm [shape: s32[1,1,128], index: 2, kind: output, shape index: {0}]   ;;  %s150_s3 = inlined_call_operand.vmem [shape: f32[1,1,128], index: 3, kind: output, shape index: {1}]  }
   0x1   :  { %v15_v0 = vld [vmem:[%s148_s1] sm:$0xff] }
   0x2   :  { %9 = vsyncpa [#allocation3], 0  ;;  %76 = vlog2.f32 %v15_v0  ;;  %v14_v6 = vld [vmem:[%s147_s0] sm:$0xff]  ;;  %v29_v10 = vlaneseq  ;;  %s104_s0 = smov [#allocation2]   ;;  %v105_v27 = vmov 0.0  }
   0x3   :  { %s59_s1 = sshll.u32 %s104_s0, 4  ;;  %s60_s1 = int_to_ptr.vmem [resolvable:$true] %s59_s1 }
   0x4   :  { %v30_v13 = vshrl.u32 %v29_v10, 7  ;;  %s80_s16 = scalar_lea.vmem %s60_s1, 16  ;;  %s84_s17 = scalar_lea.vmem %s60_s1, 32 }
   0x5   :  { %p81_p0 = scmp.ne.s32.totalorder %s60_s1, %s80_s16  ;;  %p85_p1 = scmp.lt.s32.totalorder %s60_s1, %s60_s1 }
   0x6   :  { %v31_v16 = vcvt.s32.f32 %v30_v13  ;;  %p86_p2 = scmp.lt.s32.totalorder %s84_s17, %s80_s16 }
   0x8   :  { %p87_p3 = por %p86_p2, %p85_p1 }
   0xa   :  { %p88_p4 = pnand %p87_p3, %p81_p0 }
   0xc   :  { %v77_v1 = vpop.eup %76 }
   0xd   :  { %v17_v2 = vmul.f32 0.6931472, %v77_v1 }
   0xf   :  { %v18_v3 = vsub.f32 0.0, %v17_v2 }
  0x11   :  { %78 = vlog2.f32 %v18_v3 }
  0x1b   :  { %v79_v4 = vpop.eup %78 }
  0x1c   :  { %v20_v5 = vmul.f32 0.6931472, %v79_v4 }
  0x1e   :  { %v21_v7 = vsub.f32 0.0, %v20_v5 }
  0x20   :  { %v22_v8 = vadd.f32 %v21_v7, %v14_v6 }
  0x22   :  { %v23_v9 = vrot.slane %v22_v8, 4 }
  0x24   :  { %v24_v11 = vmax.f32 %v22_v8, %v23_v9 }
  0x26   :  { %v25_v12 = vrot.slane %v24_v11, 2 }
  0x28   :  { %v26_v14 = vmax.f32 %v24_v11, %v25_v12 }
  0x2a   :  { %v27_v15 = vrot.slane %v26_v14, 1 }
  0x2c   :  { %v28_v17 = vmax.f32 %v26_v14, %v27_v15 }
  0x2e   :  { %vm32_vm0 = vcmp.ge.f32.partialorder %v22_v8, %v28_v17 }
  0x2f   :  { %v33_v18 = vsel %vm32_vm0, %v31_v16, 8.0 }
  0x30   :  { %v34_v19 = vrot.slane %v33_v18, 4 }
  0x32   :  { %v35_v20 = vmin.f32 %v33_v18, %v34_v19 }
  0x34   :  { %v36_v21 = vrot.slane %v35_v20, 2 }
  0x36   :  { %v37_v22 = vmin.f32 %v35_v20, %v36_v21 }
  0x38   :  { %v38_v23 = vrot.slane %v37_v22, 1 }
  0x3a   :  { %v39_v24 = vmin.f32 %v37_v22, %v38_v23 }
  0x3c   :  { %v72_v25 = vtrunc.f32 %v39_v24 }
  0x3e   :  { %v73_v26 = vcvt.f32.s32 %v72_v25 }
  0x40   :  { %vm41_vm1 = vcmp.eq.s32.totalorder %v30_v13, %v73_v26  ;;  %51 = vst [vmem:[#allocation2] sm:$0x1] %v73_v26 }
  0x41   :  { %v71_v28 = vsel %vm41_vm1, 1.0, %v105_v27 }
  0x42   :  { %91 = shalt.err (!%p88_p4)
}
  0x43   :  { %s92_s20 = scalar_lea.hbm %s149_s2, 16 }
  0x44   :  { %p93_p5 = scmp.ne.s32.totalorder %s149_s2, %s92_s20  ;;  %p96_p6 = scmp.lt.u32.totalorder %s92_s20, %s149_s2 }
  0x46   :  { %p98_p7 = pnand %p96_p6, %p93_p5 }
  0x48   :  { %101 = shalt.err (!%p98_p7)
}
  0x49   :  { %62 = dma.vmem_to_hbm [thread:$0]  %s60_s1, 16, %s149_s2, [#allocation3]   ;;  %v44_v29 = vmul.f32 %v71_v28, %v14_v6 }
  0x4b   :  { %v45_v30 = vrot.slane %v44_v29, 4 }
  0x4d   :  { %v46_v31 = vadd.f32 %v45_v30, %v44_v29 }
  0x4f   :  { %v47_v32 = vrot.slane %v46_v31, 2 }
  0x51   :  { %v48_v33 = vadd.f32 %v47_v32, %v46_v31 }
  0x53   :  { %v49_v34 = vrot.slane %v48_v33, 1 }
  0x55   :  { %v50_v35 = vadd.f32 %v49_v34, %v48_v33 }
  0x57   :  { %52 = vst [vmem:[%s150_s3] sm:$0x1] %v50_v35 }
  0x58   :  { %102 = dma.done.wait [#allocation3], 16  }
  0x59   :  { %103 = vsyncadd [#allocation3], 4294967280 }
  0x5a   :  { %70 = vsyncpa [#allocation3], 1 }

</bundles_post_ra>
